<compile_context>
chip_gen: v6e
topology: v6e:2x2x1
jax: 0.10.0
libtpu: 0.0.40
codegen_flags: <defaults>
</compile_context>

<pallas_src>
import functools

import jax
import jax.numpy as jnp
from jax.experimental import pallas as pl
from jax.experimental.pallas import tpu as pltpu


# -----------------------------------------------------------------------------
# Kernels
# -----------------------------------------------------------------------------

def _se_block_kernel(x_ref, w1_ref, w2_ref, o_ref, *, inv_hw):
    """Fused pool + gate + scale for one (TB, C, HWp) slab."""
    # Global average pool over the spatial (lane) dim, accumulated in f32.
    y = jnp.sum(x_ref[...], axis=-1, dtype=jnp.float32) * inv_hw          # (TB, C)
    # FC1 (no bias) + ReLU: (TB, C) x (hid, C)^T -> (TB, hid).  Weights go to
    # the MXU in their native dtype; accumulate in f32.
    h = jnp.maximum(
        jnp.einsum("bc,hc->bh", y, w1_ref[...],
                   preferred_element_type=jnp.float32), 0.0)
    # FC2 (no bias) + sigmoid: (TB, hid) x (C, hid)^T -> (TB, C).
    s = jax.nn.sigmoid(
        jnp.einsum("bh,ch->bc", h, w2_ref[...],
                   preferred_element_type=jnp.float32))
    # Scale: broadcast the gate over the spatial lanes; multiply in input dtype.
    o_ref[...] = x_ref[...] * s.astype(o_ref.dtype)[:, :, None]


def _pool_kernel(x_ref, o_ref):
    """Pass 1: f32 partial spatial sums, accumulated across the HW grid axis."""
    @pl.when(pl.program_id(1) == 0)
    def _():
        o_ref[...] = jnp.zeros_like(o_ref)
    o_ref[...] += jnp.sum(x_ref[...], axis=-1, dtype=jnp.float32)[:, None, :]


def _scale_kernel(x_ref, y_ref, w1_ref, w2_ref, o_ref, *, inv_hw):
    """Pass 2: gate from pooled partial sums (tiny, hidden under DMA) + scale."""
    y = jnp.sum(y_ref[...], axis=0) * inv_hw                              # (1, C)
    h = jnp.maximum(
        jnp.einsum("bc,hc->bh", y, w1_ref[...],
                   preferred_element_type=jnp.float32), 0.0)
    s = jax.nn.sigmoid(
        jnp.einsum("bh,ch->bc", h, w2_ref[...],
                   preferred_element_type=jnp.float32))
    o_ref[...] = x_ref[...] * s.astype(o_ref.dtype)[:, :, None]


# -----------------------------------------------------------------------------
# Tiling / sizing helpers
# -----------------------------------------------------------------------------

def _round_up(n, m):
    return -(-n // m) * m


def _chip_info():
    """(tensorcores_per_chip, vmem_limit cap, default block target bytes)."""
    try:
        kind = jax.devices()[0].device_kind.lower()
    except Exception:
        kind = ""
    if "v7" in kind or "7x" in kind:
        # v7x: 2 TCs/chip, 64 MiB physical VMEM per TC -> stay well under it.
        return 2, 56 << 20, 8 << 20
    if "v6" in kind or "v5e" in kind or "lite" in kind:
        # v5e / v6e: single TC, 128 MiB VMEM -> big blocks, no grid split.
        return 1, 96 << 20, 16 << 20
    if "v5" in kind or "v4" in kind:
        # v4 / v5p megacore: 2-way parallel sharding, 128 MiB VMEM.
        return 2, 96 << 20, 16 << 20
    # Unknown generation: conservative sizes that fit all supported chips.
    return 2, 40 << 20, 4 << 20


def _pick_batch_tile(B, per_batch_bytes, num_cores, target_bytes):
    """Batch rows fused per grid step."""
    cap = max(1, target_bytes // max(per_batch_bytes, 1))
    if num_cores > 1 and B > 1:
        # Keep >= 2 grid steps per TensorCore so each core still double-buffers.
        cap = min(cap, max(1, B // (2 * num_cores)))
    cap = min(cap, B)
    # Largest exact divisor of B not exceeding cap (no batch-padding copies).
    best = 1
    for d in range(1, cap + 1):
        if B % d == 0:
            best = d
    if best == cap or best * per_batch_bytes >= target_bytes // 4:
        return best
    # Divisors are all tiny (awkward B): use the smallest tile that reaches the
    # same number of grid steps as `cap`, padding B by at most (steps - 1) rows.
    steps = -(-B // cap)
    return -(-B // steps)


def _vmem_limit(block_bytes, weight_bytes, vmem_cap):
    need = 6 * block_bytes + 2 * weight_bytes + (4 << 20)
    return int(min(vmem_cap, max(32 << 20, need)))


# -----------------------------------------------------------------------------
# Dispatch paths
# -----------------------------------------------------------------------------

def _se_single_slab(x2, w1, w2, target, vmem_cap, num_cores):
    """One fused kernel per (TB, C, HWp) slab.  Returns (B, C, HWp)."""
    B, C, HW = x2.shape
    hid = w1.shape[0]
    itemsize = jnp.dtype(x2.dtype).itemsize

    HWp = _round_up(HW, 128)                  # lane-dense (unmasked) stores
    if HWp != HW:
        x2 = jnp.pad(x2, ((0, 0), (0, 0), (0, HWp - HW)))

    per_batch_bytes = C * HWp * itemsize
    TB = _pick_batch_tile(B, per_batch_bytes, num_cores, target)
    Bp = _round_up(B, TB)
    if Bp != B:
        x2 = jnp.pad(x2, ((0, Bp - B), (0, 0), (0, 0)))   # padded rows sliced off

    weight_bytes = (w1.size * jnp.dtype(w1.dtype).itemsize
                    + w2.size * jnp.dtype(w2.dtype).itemsize)
    vmem_limit = _vmem_limit(TB * per_batch_bytes, weight_bytes, vmem_cap)

    kern = functools.partial(_se_block_kernel, inv_hw=1.0 / HW)
    out = pl.pallas_call(
        kern,
        out_shape=jax.ShapeDtypeStruct((Bp, C, HWp), x2.dtype),
        grid=(Bp // TB,),
        in_specs=[
            pl.BlockSpec((TB, C, HWp), lambda b: (b, 0, 0)),
            pl.BlockSpec((hid, C), lambda b: (0, 0)),
            pl.BlockSpec((C, hid), lambda b: (0, 0)),
        ],
        out_specs=pl.BlockSpec((TB, C, HWp), lambda b: (b, 0, 0)),
        compiler_params=pltpu.CompilerParams(
            dimension_semantics=("parallel",),
            vmem_limit_bytes=vmem_limit,
        ),
    )(x2, w1, w2)
    return out[:B]


def _se_two_pass(x2, w1, w2, target, vmem_cap, num_cores):
    """Pooled-gate pass + elementwise-scale pass over HW chunks.  Returns (B, C, HWp)."""
    B, C, HW = x2.shape
    hid = w1.shape[0]
    itemsize = jnp.dtype(x2.dtype).itemsize

    # HW chunk: ~target bytes per (1, C, chunk) block, multiple of 128 lanes.
    chunk = max(128, (target // max(C * itemsize, 1)) // 128 * 128)
    chunk = min(chunk, _round_up(HW, 128))
    n_chunks = -(-HW // chunk)

    # Parallel partial-sum groups so the pooling reduction itself shards across
    # TensorCores when B alone cannot fill them (e.g. B == 1 on v7x).
    if num_cores > 1 and B < 2 * num_cores:
        G = min(2 * num_cores, n_chunks)
    else:
        G = 1
    nhw_in = -(-n_chunks // G)
    n_chunks = G * nhw_in
    HWp = n_chunks * chunk
    if HWp != HW:
        x2 = jnp.pad(x2, ((0, 0), (0, 0), (0, HWp - HW)))  # zeros: mean unaffected

    block_bytes = C * chunk * itemsize
    weight_bytes = (w1.size * jnp.dtype(w1.dtype).itemsize
                    + w2.size * jnp.dtype(w2.dtype).itemsize)
    vmem_limit = _vmem_limit(block_bytes, weight_bytes, vmem_cap)

    # Pass 1: pooled partial sums, one (1, 1, C) f32 row per (batch, group).
    pooled = pl.pallas_call(
        _pool_kernel,
        out_shape=jax.ShapeDtypeStruct((B * G, 1, C), jnp.float32),
        grid=(B * G, nhw_in),
        in_specs=[
            pl.BlockSpec((1, C, chunk),
                         lambda bg, h: (bg // G, 0, (bg % G) * nhw_in + h)),
        ],
        out_specs=pl.BlockSpec((1, 1, C), lambda bg, h: (bg, 0, 0)),
        compiler_params=pltpu.CompilerParams(
            dimension_semantics=("parallel", "arbitrary"),
            vmem_limit_bytes=vmem_limit,
        ),
    )(x2)

    # Pass 2: gate (recomputed per chunk from the tiny pooled sums) + scale.
    kern = functools.partial(_scale_kernel, inv_hw=1.0 / HW)
    out = pl.pallas_call(
        kern,
        out_shape=jax.ShapeDtypeStruct((B, C, HWp), x2.dtype),
        grid=(B, n_chunks),
        in_specs=[
            pl.BlockSpec((1, C, chunk), lambda b, h: (b, 0, h)),
            pl.BlockSpec((G, 1, C), lambda b, h: (b, 0, 0)),
            pl.BlockSpec((hid, C), lambda b, h: (0, 0)),
            pl.BlockSpec((C, hid), lambda b, h: (0, 0)),
        ],
        out_specs=pl.BlockSpec((1, C, chunk), lambda b, h: (b, 0, h)),
        compiler_params=pltpu.CompilerParams(
            dimension_semantics=("parallel", "parallel"),
            vmem_limit_bytes=vmem_limit,
        ),
    )(x2, pooled, w1, w2)
    return out


def se_layer(x, w1, w2, *, force_split=False, target_block_bytes=None):
    """SELayer forward.  x: (B, C, H, W); w1: (C//r, C); w2: (C, C//r)."""
    B, C, H, W = x.shape
    HW = H * W
    itemsize = jnp.dtype(x.dtype).itemsize

    num_cores, vmem_cap, default_target = _chip_info()
    target = int(target_block_bytes) if target_block_bytes else default_target

    x2 = x.reshape(B, C, HW)
    per_batch_bytes = C * _round_up(HW, 128) * itemsize
    use_split = (
        force_split
        # A single-batch slab too big to double-buffer in + out within VMEM.
        or per_batch_bytes > vmem_cap // 5
        # Small batch on a multi-core chip: grid over HW so every core has work.
        or (num_cores > 1 and B < 2 * num_cores
            and B * per_batch_bytes > (8 << 20)))

    if use_split:
        out = _se_two_pass(x2, w1, w2, target, vmem_cap, num_cores)
    else:
        out = _se_single_slab(x2, w1, w2, target, vmem_cap, num_cores)
    return out[:, :, :HW].reshape(B, C, H, W)


def se_layer_ref(x, w1, w2):
    """Pure-JAX reference (eval-mode dropout == identity)."""
    y = jnp.mean(x.astype(jnp.float32), axis=(2, 3))   # (B, C)
    h = jnp.maximum(y @ w1.T, 0.0)                     # (B, C//r)
    s = jax.nn.sigmoid(h @ w2.T)                       # (B, C)
    return (x * s.astype(x.dtype)[:, :, None, None]).astype(x.dtype)


if __name__ == "__main__":
    # Small shapes consistent with the module: channels divisible by reduction=16.
    B, C, H, W = 2, 32, 16, 16
    reduction = 16
    hid = C // reduction

    key = jax.random.PRNGKey(0)
    kx, k1, k2, k3 = jax.random.split(key, 4)

    x = jax.random.normal(kx, (B, C, H, W), dtype=jnp.float32)
    # nn.Linear weight shapes: (out_features, in_features), no biases.
    w1 = jax.random.normal(k1, (hid, C), dtype=jnp.float32) * 0.1   # Linear(C, C//r)
    w2 = jax.random.normal(k2, (C, hid), dtype=jnp.float32) * 0.1   # Linear(C//r, C)

    # Main run: fused single-slab path (HW = 256, lane-dense as-is).
    out = jax.block_until_ready(se_layer(x, w1, w2))
    ref = se_layer_ref(x, w1, w2)
    assert out.shape == (B, C, H, W)
    assert jnp.allclose(out, ref, atol=1e-5, rtol=1e-5), "single-slab mismatch"

    # Also exercise the two-pass split path, HW-chunk accumulation and the
    # non-multiple-of-128 spatial padding, still at small shapes.
    x_small = jax.random.normal(k3, (B, C, 12, 12), dtype=jnp.float32)
    out2 = jax.block_until_ready(
        se_layer(x_small, w1, w2, force_split=True, target_block_bytes=16 * 1024))
    ref2 = se_layer_ref(x_small, w1, w2)
    assert out2.shape == x_small.shape
    assert jnp.allclose(out2, ref2, atol=1e-5, rtol=1e-5), "two-pass mismatch"

    print("KERNEL_OK")
</pallas_src>

<mosaic_0001>
module attributes {stable_mosaic.version = 11 : i64} {
  func.func @_se_block_kernel(%arg0: i32, %arg1: memref<1x32x256xf32, #tpu.memory_space<vmem>>, %arg2: memref<2x32xf32, #tpu.memory_space<vmem>>, %arg3: memref<32x2xf32, #tpu.memory_space<vmem>>, %arg4: memref<1x32x256xf32, #tpu.memory_space<vmem>>) attributes {dimension_semantics = [#tpu.dimension_semantics<parallel>], iteration_bounds = array<i64: 2>, scalar_prefetch = 0 : i64, scratch_operands = 0 : i64, tpu.core_type = #tpu.core_type<tc>, window_params = [{transform_indices = @transform_0, window_bounds = array<i64: 1, 32, 256>}, {pipeline_mode = #tpu.pipeline_mode<synchronous>, transform_indices = @transform_1, window_bounds = array<i64: 2, 32>}, {pipeline_mode = #tpu.pipeline_mode<synchronous>, transform_indices = @transform_2, window_bounds = array<i64: 32, 2>}, {transform_indices = @transform_3, window_bounds = array<i64: 1, 32, 256>}]} {
    %c0 = arith.constant 0 : index
    %c0_0 = arith.constant 0 : index
    %c0_1 = arith.constant 0 : index
    %0 = vector.load %arg1[%c0, %c0_0, %c0_1] : memref<1x32x256xf32, #tpu.memory_space<vmem>>, vector<1x32x256xf32>
    %cst = arith.constant dense<0.000000e+00> : vector<1x32xf32>
    %1 = vector.multi_reduction <add>, %0, %cst [2] : vector<1x32x256xf32> to vector<1x32xf32>
    %cst_2 = arith.constant 3.906250e-03 : f32
    %2 = vector.broadcast %cst_2 : f32 to vector<1x32xf32>
    %3 = arith.mulf %1, %2 : vector<1x32xf32>
    %c0_3 = arith.constant 0 : index
    %c0_4 = arith.constant 0 : index
    %4 = vector.load %arg2[%c0_3, %c0_4] : memref<2x32xf32, #tpu.memory_space<vmem>>, vector<2x32xf32>
    "tpu.trace_start"() <{level = 10 : i32, message = "bc,hc->bh"}> : () -> ()
    %cst_5 = arith.constant dense<0.000000e+00> : vector<1x2xf32>
    %5 = tpu.matmul %3, %4, %cst_5 {dimension_numbers = #tpu.dot_dimension_numbers<[1], [1], [0], [0], [0, 0, 1, 0], [], []>} : vector<1x32xf32>, vector<2x32xf32>, vector<1x2xf32> -> vector<1x2xf32>
    "tpu.trace_stop"() : () -> ()
    %cst_6 = arith.constant 0.000000e+00 : f32
    %6 = vector.broadcast %cst_6 : f32 to vector<1x2xf32>
    %7 = arith.maximumf %5, %6 : vector<1x2xf32>
    %c0_7 = arith.constant 0 : index
    %c0_8 = arith.constant 0 : index
    %8 = vector.load %arg3[%c0_7, %c0_8] : memref<32x2xf32, #tpu.memory_space<vmem>>, vector<32x2xf32>
    "tpu.trace_start"() <{level = 10 : i32, message = "bh,ch->bc"}> : () -> ()
    %cst_9 = arith.constant dense<0.000000e+00> : vector<1x32xf32>
    %9 = tpu.matmul %7, %8, %cst_9 {dimension_numbers = #tpu.dot_dimension_numbers<[1], [1], [0], [0], [0, 0, 1, 0], [], []>} : vector<1x2xf32>, vector<32x2xf32>, vector<1x32xf32> -> vector<1x32xf32>
    "tpu.trace_stop"() : () -> ()
    %10 = arith.negf %9 : vector<1x32xf32>
    %11 = math.exp %10 : vector<1x32xf32>
    %cst_10 = arith.constant 1.000000e+00 : f32
    %12 = vector.broadcast %cst_10 : f32 to vector<1x32xf32>
    %13 = arith.addf %12, %11 : vector<1x32xf32>
    %14 = arith.divf %12, %13 : vector<1x32xf32>
    %c0_11 = arith.constant 0 : index
    %c0_12 = arith.constant 0 : index
    %c0_13 = arith.constant 0 : index
    %15 = vector.load %arg1[%c0_11, %c0_12, %c0_13] : memref<1x32x256xf32, #tpu.memory_space<vmem>>, vector<1x32x256xf32>
    %16 = vector.shape_cast %14 : vector<1x32xf32> to vector<1x32x1xf32>
    %17 = vector.broadcast %16 : vector<1x32x1xf32> to vector<1x32x256xf32>
    %18 = arith.mulf %15, %17 : vector<1x32x256xf32>
    %c0_14 = arith.constant 0 : index
    %c0_15 = arith.constant 0 : index
    %c0_16 = arith.constant 0 : index
    %19 = vector.load %arg4[%c0_14, %c0_15, %c0_16] : memref<1x32x256xf32, #tpu.memory_space<vmem>>, vector<1x32x256xf32>
    tpu.vector_store %arg4[%c0_14, %c0_15, %c0_16], %18 {strides = array<i32>} : memref<1x32x256xf32, #tpu.memory_space<vmem>>, vector<1x32x256xf32>,
    return
  }
  func.func @transform_0(%arg0: i32) -> (i32, i32, i32) {
    %c0_i32 = arith.constant 0 : i32
    %c0_i32_0 = arith.constant 0 : i32
    %c0_i32_1 = arith.constant 0 : i32
    return %arg0, %c0_i32, %c0_i32_0 : i32, i32, i32
  }
  func.func @transform_1(%arg0: i32) -> (i32, i32) {
    %c0_i32 = arith.constant 0 : i32
    %c0_i32_0 = arith.constant 0 : i32
    %c0_i32_1 = arith.constant 0 : i32
    return %c0_i32, %c0_i32_0 : i32, i32
  }
  func.func @transform_2(%arg0: i32) -> (i32, i32) {
    %c0_i32 = arith.constant 0 : i32
    %c0_i32_0 = arith.constant 0 : i32
    %c0_i32_1 = arith.constant 0 : i32
    return %c0_i32, %c0_i32_0 : i32, i32
  }
  func.func @transform_3(%arg0: i32) -> (i32, i32, i32) {
    %c0_i32 = arith.constant 0 : i32
    %c0_i32_0 = arith.constant 0 : i32
    %c0_i32_1 = arith.constant 0 : i32
    return %arg0, %c0_i32, %c0_i32_0 : i32, i32, i32
  }
}

</mosaic_0001>

<bundles_post_ra>
// kernel: tpu_custom_call.1
= control target key start
LH: loop header
LB: loop body
LE: loop exit
PB: predicated region body
PF: predicated region fallthrough
CT: control target
= control target key end

     0   :  { %8 = vsyncpa [#allocation3], 0  ;;  %s985_s0 = inlined_call_operand.hbm [shape: f32[2,32,256], index: 0, kind: input, shape index: {}]   ;;  %s986_s1 = inlined_call_operand.vmem [shape: f32[2,32], index: 1, kind: input, shape index: {}]   ;;  %s987_s2 = inlined_call_operand.vmem [shape: f32[32,2], index: 2, kind: input, shape index: {}]   ;;  %s988_s3 = inlined_call_operand.hbm [shape: f32[2,32,256], index: 3, kind: output, shape index: {}]  }
   0x1   :  { %10 = vsyncpa [#allocation3 + $0x1], 0 }
   0x2   :  { %11 = vsyncpa [#allocation4], 0 }
   0x3   :  { %13 = vsyncpa [#allocation4 + $0x1], 0  ;;  %s773_s12 = smov 0   ;;  %s775_s13 = smov 0  }
   0x4   :  { %s777_s14 = smov 0   ;;  %s779_s15 = smov 0  }
   0x5 LB: > { %s794_s16 = sadd.s32 4294967295, %s743_s15   ;;  %s548_s17 = sadd.s32 4294967294, %s743_s15   ;;  %s743_s15 = sphi %s779_s15, %s1003_s15   ;;  %s739_s14 = sphi %s777_s14, %s1002_s14   ;;  %s735_s13 = sphi %s775_s13, %s1001_s13   ;;  %s731_s12 = sphi %s773_s12, %s1000_s12  }
   0x6   : > { %s798_s18 = sadd.s32 1, %s743_s15   ;;  %s26_s19 = sadd.s32 1, %s739_s14 }
   0x7   : > { %s23_s20 = ssub.s32 %s743_s15, %s798_s18  ;;  %p33_p0 = scmp.ne.s32.totalorder %s739_s14, %s735_s13 }
   0x8   : > { %p24_p1 = scmp.eq.s32.totalorder %s23_s20, 0  ;;  %p34_p2 = scmp.eq.s32.totalorder %s743_s15, 0 }
   0x9   : > { %p39_p3 = scmp.ne.s32.totalorder %s735_s13, %s731_s12  ;;  %p40_p4 = scmp.eq.s32.totalorder %s794_s16, 0 }
   0xa   : > { %s810_s21 = scalar_select %p24_p1, %s739_s14, %s26_s19  }
   0xb   : > { %p812_p5 = por %p34_p2, %p33_p0  ;;  %p816_p6 = por %p40_p4, %p39_p3 }
   0xc   : > { %p105_p7 = scmp.eq.s32.totalorder %s794_s16, 1  ;;  %p111_p8 = scmp.eq.s32.totalorder %s548_s17, 1 }
   0xd   : > { %s992_s23 = scalar_select %p816_p6, 1, 0 }
   0xe   : > { %p607_p10 = scmp.lt.s32.totalorder %s743_s15, 2  ;;  %p823_p11 = por %p105_p7, %p33_p0 }
   0xf   : > { %p827_p12 = por %p111_p8, %p39_p3  ;;  %s137_s26 = sand.u32 1, %s739_s14  }
  0x10   : > { %s993_s24 = scalar_select %p823_p11, 1, 0 }
  0x11   : > { %s994_s25 = scalar_select %p827_p12, 1, 0 }
  0x12   : > { %s570_s27 = sshll.u32 %s743_s15, 10  ;;  %s551_s28 = sshll.u32 %s137_s26, 6 }
  0x13   : > { %s836_s4 = scalar_lea.hbm %s985_s0, %s570_s27  ;;  %s141_s5 = scalar_lea.vmem [#allocation2], %s551_s28 }
  0x14   : > { %s148_s6 = sshll.u32 %s141_s5, 4  ;;  %p840_p13 = pnand %p607_p10, %p812_p5  ;;  %s844_s6 = int_to_ptr.vmem [resolvable:$true] %s148_s6 }
  0x15   : > { %s846_s8 = scalar_lea.sflag [#allocation3], %s137_s26  ;;  %s651_s9 = scalar_lea.hbm %s836_s4, 1024 }
  0x16   : > { %p652_p0 = scmp.ne.s32.totalorder %s836_s4, %s651_s9  ;;  %p653_p1 = pneg %p840_p13 }
  0x17   : > { %s656_s17 = scalar_lea.hbm %s985_s0, 2048  ;;  %p657_p4 = scmp.lt.s32.totalorder %s836_s4, %s985_s0 }
  0x18   : > { %p654_p2 = pnand %p653_p1, %p652_p0  ;;  %p658_p5 = scmp.lt.s32.totalorder %s656_s17, %s651_s9 }
  0x1a   : > { %p655_p3 = pneg %p654_p2  ;;  %p659_p7 = por %p658_p5, %p657_p4 }
  0x1c   : > { %p660_p8 = pnand %p659_p7, %p655_p3 }
  0x1e   : > { %663 = shalt.err (!%p660_p8)
}
  0x1f   : > { %s664_s22 = scalar_lea.vmem %s844_s6, 1024  ;;  %s745_s26 = smov [#allocation2]  }
  0x20   : > { %p665_p10 = scmp.ne.s32.totalorder %s844_s6, %s664_s22  ;;  %s669_s27 = sshll.u32 %s745_s26, 4  ;;  %s670_s27 = int_to_ptr.vmem [resolvable:$false] %s669_s27 }
  0x21   : > { %s671_s28 = scalar_lea.vmem %s670_s27, 2048  ;;  %p672_p2 = scmp.lt.s32.totalorder %s844_s6, %s670_s27 }
  0x22   : > { %p667_p9 = pnand %p665_p10, %p653_p1  ;;  %p673_p12 = scmp.lt.s32.totalorder %s671_s28, %s664_s22 }
  0x24   : > { %p668_p0 = pneg %p667_p9  ;;  %p674_p11 = por %p673_p12, %p672_p2 }
  0x26   : > { %p675_p6 = pnand %p674_p11, %p668_p0 }
  0x28   : > { %678 = shalt.err (!%p675_p6)
}
  0x29   : > { %s746_s29 = smov 256   ;;  %s747_s30 = smov 16  }
  0x2a   : > { %602 = dma.hbm_to_vmem [thread:$0]  (!%p840_p13), %s836_s4, 1024, %s844_s6, %s846_s8, %s746_s29, %s746_s29, %s747_s30  }
  0x2b   : > { %p554_p9 = scmp.ge.s32.totalorder %s743_s15, 1  ;;  %p156_p1 = scmp.lt.s32.totalorder %s743_s15, 3 }
  0x2d   : > { %p157_p3 = pnand %p554_p9, %p156_p1 }
  0x2e   : > { %s870_s5 = sand.u32 (!%p157_p3), 1, %s735_s13   ;;  %p996_p6 = scmp.ne.s32.totalorder (!%p157_p3), %s992_s23, 0 }
  0x2f   : > { %160 = sbr.rel (%p157_p3) target bundleno = 766 (0x2fe), region = 32  ;;  %s555_s9 = sshll.u32 (!%p157_p3), %s870_s5, 6 }
  0x30   : > { %s163_s10 = scalar_lea.sflag (!%p157_p3), [#allocation3], %s870_s5  ;;  %s166_s11 = scalar_lea.vmem (!%p157_p3), [#allocation2], %s555_s9 }
  0x34   : > { %722 = dma.done.wait (%p996_p6), %s163_s10, 1024  }
  0x35   : > { %724 = vsyncadd (%p996_p6), %s163_s10, 4294966272  ;;  %v880_v0 = vld [vmem:[%s166_s11] sm:$0xff]  ;;  %v882_v1 = vld [vmem:[%s166_s11 + $0x8] sm:$0xff]  ;;  %v748_v12 = vmov 0.0   ;;  %vm245_vm0 = vcmask 261120   ;;  %vm749_vm1 = vmmov 0   ;;  %v218_v17 = vlaneseq }
  0x36   : > { %v884_v2 = vld [vmem:[%s166_s11 + $0x20] sm:$0xff]  ;;  %v197_v3 = vadd.f32 %v882_v1, %v880_v0  ;;  %v888_v4 = vld [vmem:[%s166_s11 + $0x28] sm:$0xff]  ;;  %v890_v5 = vld [vmem:[%s166_s11 + $0x10] sm:$0xff]  ;;  %579 = vmatprep.subr.mxu0 %v748_v12  ;;  %584 = vmatprep.subr.mxu1 %v748_v12  ;;  %vm326_vm2 = vcmask 15360   ;;  %vm229_vm3 = vcmask 130112   ;;  %vm236_vm4 = vcmask 195712  }
  0x37   : > { %v892_v6 = vld [vmem:[%s166_s11 + $0x18] sm:$0xff]  ;;  %v203_v7 = vadd.f32 %v888_v4, %v884_v2  ;;  %v896_v8 = vld [vmem:[%s166_s11 + $0x30] sm:$0xff]  ;;  %v213_v13 = vld [vmem:[%s986_s1] sm:$0x3]  ;;  %581 = vmatprep.mubr.msk.f32.mxu0 %vm749_vm1, %v748_v12  ;;  %592 = vmatprep.mubr.msk.f32.mxu1 %vm749_vm1, %v748_v12  ;;  %v219_v18 = vand.u32 127, %v218_v17  ;;  %v221_v19 = vshrl.u32 %v218_v17, 7 }
  0x38   : > { %v898_v9 = vld [vmem:[%s166_s11 + $0x38] sm:$0xff]  ;;  %198 = vadd.xlane.f32.xlu0 %v197_v3  ;;  %v200_v10 = vadd.f32 %v892_v6, %v890_v5  ;;  %580 = vmatpush3.xpose.msk.msra.mxu0 %vm245_vm0, %v213_v13  ;;  %v324_v15 = vld [vmem:[%s987_s2 + $0x10] sm:$0xff]  ;;  %v323_v16 = vld [vmem:[%s987_s2 + $0x8] sm:$0xff]  ;;  %vm243_vm5 = vcmask 261312   ;;  %s188_s27 = scalar_lea.vmem [#allocation5], %s555_s9  ;;  %s571_s29 = sshll.u32 %s794_s16, 10 }
  0x39   : > { %204 = vadd.xlane.f32.xlu1 %v203_v7  ;;  %v206_v11 = vadd.f32 %v898_v9, %v896_v8  ;;  %v325_v14 = vld [vmem:[%s987_s2 + $0x18] sm:$0xff]  ;;  %v224_v20 = vadd.s32 4294967288, %v219_v18  ;;  %v231_v22 = vadd.s32 4294967280, %v219_v18  ;;  %v238_v23 = vadd.s32 4294967272, %v219_v18  ;;  %v322_v42 = vld [vmem:[%s987_s2] sm:$0xff]  ;;  %s475_s28 = sshll.u32 %s188_s27, 4  ;;  %s940_s10 = scalar_lea.hbm %s988_s3, %s571_s29  ;;  %s935_s28 = int_to_ptr.vmem [resolvable:$true] %s475_s28 }
  0x3a   : > { %585 = vmatpush3.xpose.msk.msra.mxu1 %vm326_vm2, %v325_v14  ;;  %v222_v25 = vsub.s32 %v219_v18, %v221_v19  ;;  %v428_v51 = vsub.s32 0, %v221_v19  ;;  %s462_s16 = scalar_lea.sflag [#allocation4], %s870_s5  ;;  %s679_s11 = scalar_lea.vmem %s935_s28, 1024 }
  0x3b   : > { %586 = vmatprep.subr.mxu1 %v748_v12  ;;  %v227_v27 = vsub.s32 %v224_v20, %v221_v19  ;;  %v234_v28 = vsub.s32 %v231_v22, %v221_v19  ;;  %v241_v31 = vsub.s32 %v238_v23, %v221_v19  ;;  %p680_p11 = scmp.ne.s32.totalorder %s935_s28, %s679_s11  ;;  %p997_p12 = scmp.ne.s32.totalorder %s993_s24, 0 }
  0x3c   : > { %201 = vadd.xlane.f32.xlu0 %v200_v10  ;;  %s750_s23 = smov [#allocation5]  }
  0x3d   : > { %207 = vadd.xlane.f32.xlu1 %v206_v11  ;;  %p681_p13 = pnand %p680_p11, %p997_p12  ;;  %s683_s4 = sshll.u32 %s750_s23, 4  ;;  %s684_s4 = int_to_ptr.vmem [resolvable:$false] %s683_s4 }
  0x3e   : > { %587 = vmatpush3.xpose.msk.msra.mxu1 %vm326_vm2, %v324_v15  ;;  %s685_s6 = scalar_lea.vmem %s684_s4, 2048  ;;  %p686_p5 = scmp.lt.s32.totalorder %s935_s28, %s684_s4 }
  0x3f   : > { %588 = vmatprep.subr.mxu1 %v748_v12  ;;  %p682_p4 = pneg %p681_p13  ;;  %p687_p7 = scmp.lt.s32.totalorder %s685_s6, %s679_s11 }
  0x41   : > { %p688_p8 = por %p687_p7, %p686_p5 }
  0x42   : > { %589 = vmatpush3.xpose.msk.msra.mxu1 %vm326_vm2, %v323_v16 }
  0x43   : > { %590 = vmatprep.subr.mxu1 %v748_v12  ;;  %p689_p10 = pnand %p688_p8, %p682_p4 }
  0x46   : > { %591 = vmatpush3.xpose.msk.msra.mxu1 %vm326_vm2, %v322_v42 }
  0xc1   : > { %v199_v21 = vpop.xlane.xlu0 %198 }
  0xc2   : > { %v205_v24 = vpop.xlane.xlu1 %204  ;;  %v209_v26 = vmul.f32 0.00390625, %v199_v21 }
  0xc3   : > { %v211_v29 = vmul.f32 0.00390625, %v205_v24 }
  0xc4   : > { %v223_v35 = vrot.slane %v209_v26, %v222_v25 }
  0xc5   : > { %v202_v30 = vpop.xlane.xlu0 %201  ;;  %v235_v37 = vrot.slane %v211_v29, %v234_v28 }
  0xc6   : > { %v210_v32 = vmul.f32 0.00390625, %v202_v30  ;;  %v208_v33 = vpop.xlane.xlu1 %207 }
  0xc7   : > { %v212_v34 = vmul.f32 0.00390625, %v208_v33 }
  0xc8   : > { %v228_v36 = vrot.slane %v210_v32, %v227_v27 }
  0xc9   : > { %v242_v38 = vrot.slane %v212_v34, %v241_v31 }
  0xca   : > { %v230_v39 = vsel %vm229_vm3, %v228_v36, %v223_v35 }
  0xcb   : > { %v237_v40 = vsel %vm236_vm4, %v235_v37, %v230_v39 }
  0xcc   : > { %v244_v41 = vsel %vm243_vm5, %v242_v38, %v237_v40 }
  0xcd   : > { %582 = vmatmul.mubr.msk.f32.vlgmr.msra.gmra.mxu0 %vm245_vm0, %v244_v41 }
 0x18d   : > { %v317_v43 = vpop.f32.mrf.mxu0 }
 0x18e   : > { %v321_v44 = vmax.f32 %v317_v43, 0.0 }
 0x18f   : > { %v583_v45 = vpop.f32.mrf.mxu0 }
 0x190   : > { %593 = vmatmul.mubr.msk.f32.vlgmr.msra.gmra.mxu1 %vm326_vm2, %v321_v44 }
 0x250   : > { %v408_v46 = vpop.f32.mrf.mxu1 }
 0x251   : > { %v564_v47 = vmul.f32 -1.442695, %v408_v46 }
 0x252   : > { %v594_v48 = vpop.f32.mrf.mxu1 }
 0x253   : > { %647 = vpow2.f32 %v564_v47 }
 0x260   : > { %v648_v49 = vpop.eup %647 }
 0x261   : > { %v415_v50 = vadd.f32 1.0, %v648_v49 }
 0x263   : > { %649 = vrcp.f32 %v415_v50 }
 0x270   : > { %v650_v52 = vpop.eup %649 }
 0x271   : > { %v429_v53 = vrot.slane %v650_v52, %v428_v51 }
 0x273   : > { %435 = vbcast.lane.b32.xlu1 %v429_v53, 264  ;;  %431 = vbcast.lane.b32.xlu0 %v429_v53, 256 }
 0x277   : > { %439 = vbcast.lane.b32.xlu1 %v429_v53, 272 }
 0x27b   : > { %443 = vbcast.lane.b32.xlu1 %v429_v53, 280 }
 0x2e5   : > { %v436_v54 = vpop.permute.xlu1 %435  ;;  %v432_v55 = vpop.permute.xlu0 %431 }
 0x2e6   : > { %v447_v56 = vmul.f32 %v436_v54, %v890_v5  ;;  %v448_v57 = vmul.f32 %v436_v54, %v892_v6  ;;  %v445_v58 = vmul.f32 %v432_v55, %v880_v0  ;;  %v446_v59 = vmul.f32 %v432_v55, %v882_v1 }
 0x2e8   : > { %455 = vst [vmem:[%s188_s27 + $0x10] sm:$0xff] %v447_v56  ;;  %456 = vst [vmem:[%s188_s27 + $0x18] sm:$0xff] %v448_v57 }
 0x2e9   : > { %453 = vst [vmem:[%s188_s27] sm:$0xff] %v445_v58  ;;  %454 = vst [vmem:[%s188_s27 + $0x8] sm:$0xff] %v446_v59  ;;  %v440_v60 = vpop.permute.xlu1 %439 }
 0x2ea   : > { %v449_v61 = vmul.f32 %v440_v60, %v884_v2  ;;  %v450_v62 = vmul.f32 %v440_v60, %v888_v4 }
 0x2ec   : > { %457 = vst [vmem:[%s188_s27 + $0x20] sm:$0xff] %v449_v61  ;;  %458 = vst [vmem:[%s188_s27 + $0x28] sm:$0xff] %v450_v62 }
 0x2ed   : > { %v444_v63 = vpop.permute.xlu1 %443 }
 0x2ee   : > { %v451_v0 = vmul.f32 %v444_v63, %v896_v8  ;;  %v452_v1 = vmul.f32 %v444_v63, %v898_v9 }
 0x2f0   : > { %459 = vst [vmem:[%s188_s27 + $0x30] sm:$0xff] %v451_v0  ;;  %460 = vst [vmem:[%s188_s27 + $0x38] sm:$0xff] %v452_v1 }
 0x2f1   : > { %692 = shalt.err (!%p689_p10)
}
 0x2f2   : > { %s693_s7 = scalar_lea.hbm %s940_s10, 1024  ;;  %s697_s19 = scalar_lea.hbm %s988_s3, 2048 }
 0x2f3   : > { %p694_p0 = scmp.ne.s32.totalorder %s940_s10, %s693_s7  ;;  %p698_p1 = scmp.lt.s32.totalorder %s940_s10, %s988_s3 }
 0x2f4   : > { %p699_p3 = scmp.lt.s32.totalorder %s697_s19, %s693_s7 }
 0x2f5   : > { %p695_p2 = pnand %p694_p0, %p997_p12 }
 0x2f6   : > { %p700_p6 = por %p699_p3, %p698_p1 }
 0x2f7   : > { %p696_p9 = pneg %p695_p2 }
 0x2f9   : > { %p701_p11 = pnand %p700_p6, %p696_p9 }
 0x2fb   : > { %704 = shalt.err (!%p701_p11)
}
 0x2fc   : > { %s751_s26 = smov 256   ;;  %s752_s27 = smov 16  }
 0x2fd   : > { %597 = dma.vmem_to_hbm [thread:$0]  (%p997_p12), %s935_s28, 1024, %s940_s10, %s462_s16, %s751_s26, %s751_s26, %s752_s27  }
 0x2fe PF: > { %s490_s29 = sand.u32 1, %s731_s12   ;;  %p998_p13 = scmp.ne.s32.totalorder %s994_s25, 0 }
 0x2ff   : > { %p999_p4 = scmp.ge.s32.totalorder %s743_s15, 2  ;;  %s491_s30 = scalar_lea.sflag [#allocation4], %s490_s29 }
 0x301   : > { %p604_p5 = pnand %p999_p4, %p998_p13 }
 0x303   : > { %p605_p7 = pneg %p604_p5 }
 0x305   : > { %726 = dma.done.wait (%p605_p7), %s491_s30, 1024  }
 0x306   : > { %728 = vsyncadd (%p605_p7), %s491_s30, 4294966272  ;;  %p16_p8 = scmp.ge.s32.totalorder %s798_s18, 4   ;;  %s1000_s12 = smov %s735_s13 }
 0x307   : > { %s1001_s13 = smov %s739_s14  ;;  %s1002_s14 = smov %s810_s21 }
 0x308   : > { %s1003_s15 = smov %s798_s18  ;;  %18 = sbr.rel (!%p16_p8) target bundleno = 5 (0x5), region = 77 }
 0x30d   :  { %496 = vsyncpa [#allocation3], 1 }
 0x30e   :  { %498 = vsyncpa [#allocation3 + $0x1], 1 }
 0x30f   :  { %499 = vsyncpa [#allocation4], 1 }
 0x310   :  { %501 = vsyncpa [#allocation4 + $0x1], 1 }

</bundles_post_ra>
